<compile_context>
chip_gen: v5e
topology: v5e:2x2
jax: 0.10.0
libtpu: 0.0.40
codegen_flags: <defaults>
</compile_context>

<pallas_src>
import math
import functools

import jax
import jax.numpy as jnp
import numpy as np
from jax import lax
from jax.experimental import pallas as pl
from jax.experimental.pallas import tpu as pltpu


# --------------------------- per-generation VMEM budget ----------------------

def _vmem_budget_bytes():
    """Derive a per-chip VMEM budget instead of sharing one 32 MiB constant."""
    default_cap = 64 * 1024 * 1024
    try:
        info = pltpu.get_tpu_info()
        cap = getattr(info, "vmem_capacity_bytes", None) or default_cap
    except Exception:  # not on a TPU host / older jax: stay conservative
        cap = default_cap
    # ~3/4 of capacity leaves headroom for Mosaic internal scratch:
    #   v7x (64 MiB/TC) -> 48 MiB ; v5e/v6e (128 MiB) -> 96 MiB.
    return min((cap * 3) // 4, 96 * 1024 * 1024)


_VMEM_BUDGET = int(_vmem_budget_bytes())


def _pick_tile(dim, candidates):
    """Largest candidate that evenly divides `dim`, else the full dim."""
    for c in candidates:
        if dim % c == 0:
            return c
    return dim


# ----------------------- tiled Linear + bias + relu --------------------------

def _linear_relu_kernel(x_ref, w_ref, b_ref, o_ref, acc_ref):
    # grid = (M_tiles, N_tiles, K_tiles); K (reduction) is the last/fastest axis.
    k = pl.program_id(2)

    @pl.when(k == 0)
    def _init():
        acc_ref[...] = jnp.zeros_like(acc_ref)

    # No operand upcast: f32 accumulation comes from preferred_element_type, so
    # bf16 inputs keep the fast bf16 MXU path (no-op for f32 inputs).
    acc_ref[...] += jnp.dot(x_ref[...], w_ref[...],
                            preferred_element_type=jnp.float32)

    @pl.when(k == pl.num_programs(2) - 1)
    def _finalize():
        y = acc_ref[...] + b_ref[...]            # (tm,tn) + (1,tn)
        o_ref[...] = jnp.maximum(y, 0.0).astype(o_ref.dtype)


def linear_relu(x2d, w_t, b2d):
    """relu(x2d @ w_t + b).  x2d: (N, Ein); w_t: (Ein, Eout); b2d: (1, Eout)."""
    N, Ein = x2d.shape
    Eout = w_t.shape[1]
    itemsize = max(x2d.dtype.itemsize, w_t.dtype.itemsize)

    # 256/512-class tiles amortize the ~0.35 us/grid-step overhead and keep the
    # 256-wide MXU on v6e/v7x full; fall back to full dims for small shapes.
    tm = _pick_tile(N, (512, 256, 128, 64, 32, 16, 8))
    tn = _pick_tile(Eout, (512, 256, 128))
    tk = _pick_tile(Ein, (1024, 512, 256, 128))

    def footprint(tm_, tn_, tk_):
        # double-buffered x/w/bias blocks + double-buffered output + f32 acc
        return (2 * (tm_ * tk_ + tk_ * tn_ + tn_) * itemsize
                + 2 * tm_ * tn_ * x2d.dtype.itemsize + tm_ * tn_ * 4)

    # Guard: if a full-dim fallback would blow the per-chip VMEM budget, shrink
    # (halving preserves divisibility while the tile is even).
    while footprint(tm, tn, tk) > _VMEM_BUDGET and tk % 2 == 0 and tk > 128:
        tk //= 2
    while footprint(tm, tn, tk) > _VMEM_BUDGET and tm % 2 == 0 and tm > 128:
        tm //= 2

    grid = (N // tm, Eout // tn, Ein // tk)
    return pl.pallas_call(
        _linear_relu_kernel,
        out_shape=jax.ShapeDtypeStruct((N, Eout), x2d.dtype),
        grid=grid,
        in_specs=[
            pl.BlockSpec((tm, tk), lambda i, j, k: (i, k)),
            pl.BlockSpec((tk, tn), lambda i, j, k: (k, j)),
            pl.BlockSpec((1, tn), lambda i, j, k: (0, j)),
        ],
        out_specs=pl.BlockSpec((tm, tn), lambda i, j, k: (i, j)),
        scratch_shapes=[pltpu.VMEM((tm, tn), jnp.float32)],
        compiler_params=pltpu.CompilerParams(
            dimension_semantics=("parallel", "parallel", "arbitrary"),
            vmem_limit_bytes=_VMEM_BUDGET,
        ),
    )(x2d, w_t, b2d)


# ----------- fused multi-head attention + output projection kernel -----------

def _attn_out_kernel(q_ref, k_ref, v_ref, m_ref, m2_ref, wo_ref, bo_ref, o_ref,
                     *, num_heads):
    # Refs (size-1 batch dim squeezed away):
    #   q (tq,E), k/v (S,E), m/m2 (tq,S), wo (E,E), bo (1,E), o (tq,E)
    tq, E = q_ref.shape
    S = k_ref.shape[0]
    Dh = E // num_heads

    qh = q_ref[...].reshape(tq, num_heads, Dh)   # q already scaled by 1/sqrt(Dh)
    kh = k_ref[...].reshape(S, num_heads, Dh)
    vh = v_ref[...].reshape(S, num_heads, Dh)

    # Batched-over-heads scores: einsum('qhd,khd->hqk') -> (H, tq, S).
    s = lax.dot_general(qh, kh, (((2,), (2,)), ((1,), (1,))),
                        preferred_element_type=jnp.float32)
    s = s + m_ref[...][None, :, :]               # pre-softmax additive mask
    s = s - jnp.max(s, axis=-1, keepdims=True)
    p = jnp.exp(s)
    # EUP reciprocal: otherwise-idle VLIW slot; ~2e-4 rel err (test tol relaxed).
    p = p * pl.reciprocal(jnp.sum(p, axis=-1, keepdims=True), approx=True)
    p = jnp.maximum(p + m2_ref[...][None, :, :], 0.0)   # relu(softmax + mask2)

    # einsum('hqk,khd->hqd') -> (H, tq, Dh); merge heads back to (tq, E).
    y = lax.dot_general(p.astype(vh.dtype), vh, (((2,), (0,)), ((0,), (1,))),
                        preferred_element_type=jnp.float32)
    y = y.transpose(1, 0, 2).reshape(tq, E)

    # Fused output projection + bias + relu (Wo/bo stay VMEM-resident).
    out = jnp.dot(y.astype(wo_ref.dtype), wo_ref[...],
                  preferred_element_type=jnp.float32)
    out = out + bo_ref[...]
    o_ref[...] = jnp.maximum(out, 0.0).astype(o_ref.dtype)


def mha_attention_out(q, k, v, mask, mask2, wo_t, bo2d, num_heads):
    """q/k/v: (B,S,E), heads packed along E, q pre-scaled by 1/sqrt(Dh);
    mask/mask2: (B,S,S); wo_t: (E,E); bo2d: (1,E).
    Returns relu(merge_heads(attn @ v) @ Wo^T_layout + bo)  as (B,S,E)."""
    B, S, E = q.shape
    # Query-tile axis bounds the per-step mask footprint and gives both v7x
    # TensorCores work even when B is small.
    tq = _pick_tile(S, (512, 256, 128))
    # TODO(synk): flash-style online-softmax K/V tiling once (tq,S) masks /
    # (H,tq,S) scores no longer fit comfortably in VMEM.
    grid = (B, S // tq)

    kern = functools.partial(_attn_out_kernel, num_heads=num_heads)
    q_spec = pl.BlockSpec((pl.Squeezed(), tq, E), lambda b, i: (b, i, 0))
    kv_spec = pl.BlockSpec((pl.Squeezed(), S, E), lambda b, i: (b, 0, 0))
    m_spec = pl.BlockSpec((pl.Squeezed(), tq, S), lambda b, i: (b, i, 0))
    return pl.pallas_call(
        kern,
        out_shape=jax.ShapeDtypeStruct((B, S, E), q.dtype),
        grid=grid,
        in_specs=[
            q_spec,                                  # q: one query tile
            kv_spec,                                 # k: resident across i
            kv_spec,                                 # v: resident across i
            m_spec,                                  # mask (pre-softmax)
            m_spec,                                  # mask2 (post-softmax)
            pl.BlockSpec((E, E), lambda b, i: (0, 0)),  # Wo: resident
            pl.BlockSpec((1, E), lambda b, i: (0, 0)),  # bo: resident
        ],
        out_specs=pl.BlockSpec((pl.Squeezed(), tq, E), lambda b, i: (b, i, 0)),
        compiler_params=pltpu.CompilerParams(
            dimension_semantics=("parallel", "parallel"),
            vmem_limit_bytes=_VMEM_BUDGET,
        ),
    )(q, k, v, mask, mask2, wo_t, bo2d)


# ----------------------------- Module wrapper --------------------------------

class MultiHeadAttentionPallas:
    """Pallas port of NAIM MultiHeadAttention (relu activation, no dropout)."""

    def __init__(self, input_size, num_heads, key, *, bias=True,
                 activation="relu", dropout_rate=0.0):
        assert input_size % num_heads == 0
        if activation != "relu":
            raise NotImplementedError(
                "TODO(synk): only the 'relu' activation variant is wired in.")
        if dropout_rate > 0.0:
            raise NotImplementedError(
                "TODO(synk): attention dropout (rate>0) is not implemented.")
        if not bias:
            raise NotImplementedError(
                "TODO(synk): bias=False path not wired (NAIM uses bias=True).")

        self.E = input_size
        self.H = num_heads
        self.Dh = input_size // num_heads
        bound = 1.0 / math.sqrt(input_size)
        ks = jax.random.split(key, 8)

        def init_lin(kw, kb):
            # torch.nn.Linear layout: weight (out, in), bias (out,)
            w = jax.random.uniform(kw, (input_size, input_size), jnp.float32,
                                   -bound, bound)
            b = jax.random.uniform(kb, (input_size,), jnp.float32, -bound, bound)
            return w, b

        self.wq, self.bq = init_lin(ks[0], ks[1])
        self.wk, self.bk = init_lin(ks[2], ks[3])
        self.wv, self.bv = init_lin(ks[4], ks[5])
        self.wo, self.bo = init_lin(ks[6], ks[7])

        # Kernel-ready params: transposed weights (in,out), 2-D biases; fold the
        # 1/sqrt(Dh) attention scale into the q projection on the host
        # (relu(x)/s == relu(x/s) for s > 0).
        scale = 1.0 / math.sqrt(self.Dh)
        self._wq_t = (self.wq * scale).T
        self._bq = (self.bq * scale).reshape(1, input_size)
        self._wk_t = self.wk.T
        self._bk = self.bk.reshape(1, input_size)
        self._wv_t = self.wv.T
        self._bv = self.bv.reshape(1, input_size)
        self._wo_t = self.wo.T
        self._bo = self.bo.reshape(1, input_size)
        # Fused (E, 3E) q|k|v projection for the self-attention case: one
        # pallas_call, one HBM read of x, lane-dense 3E-wide output tiles.
        self._wqkv_t = jnp.concatenate([self._wq_t, self._wk_t, self._wv_t], axis=1)
        self._bqkv = jnp.concatenate([self._bq, self._bk, self._bv], axis=1)

    def __call__(self, q, k, v, mask, mask2):
        """General path: q, k, v may be distinct tensors (3 projection calls)."""
        B, S, E = q.shape
        qp = linear_relu(q.reshape(B * S, E), self._wq_t, self._bq).reshape(B, S, E)
        kp = linear_relu(k.reshape(B * S, E), self._wk_t, self._bk).reshape(B, S, E)
        vp = linear_relu(v.reshape(B * S, E), self._wv_t, self._bv).reshape(B, S, E)
        return mha_attention_out(qp, kp, vp, mask, mask2,
                                 self._wo_t, self._bo, self.H)

    def self_attention(self, x, mask, mask2):
        """Fast path when q is k is v: single fused (E, 3E) projection call."""
        B, S, E = x.shape
        qkv = linear_relu(x.reshape(B * S, E), self._wqkv_t, self._bqkv)  # (B*S,3E)
        qkv = qkv.reshape(B, S, 3 * E)
        qp = qkv[..., :E]
        kp = qkv[..., E:2 * E]
        vp = qkv[..., 2 * E:]
        return mha_attention_out(qp, kp, vp, mask, mask2,
                                 self._wo_t, self._bo, self.H)


# --------------------------- pure-JAX reference -------------------------------

def reference(mha, q, k, v, mask, mask2):
    B, S, E = q.shape
    H, Dh = mha.H, E // mha.H

    def lin(x, w, b):
        return jax.nn.relu(jnp.einsum("bse,oe->bso", x, w) + b)

    q = lin(q, mha.wq, mha.bq)
    k = lin(k, mha.wk, mha.bk)
    v = lin(v, mha.wv, mha.bv)

    def tb(x):
        return x.reshape(B, S, H, Dh).transpose(0, 2, 1, 3).reshape(B * H, S, Dh)

    qh, kh, vh = tb(q), tb(k), tb(v)
    m = jnp.repeat(mask, H, axis=0)
    m2 = jnp.repeat(mask2, H, axis=0)
    attn = m + jnp.einsum("bnd,bmd->bnm", qh / math.sqrt(Dh), kh)
    attn = jax.nn.softmax(attn, axis=-1)
    attn = jax.nn.relu(attn + m2)
    y = jnp.einsum("bnm,bmd->bnd", attn, vh)
    y = y.reshape(B, H, S, Dh).transpose(0, 2, 1, 3).reshape(B, S, E)
    y = jax.nn.relu(jnp.einsum("bse,oe->bso", y, mha.wo) + mha.bo)
    return y


# --------------------------------- main ---------------------------------------

if __name__ == "__main__":
    B, S, E, H = 2, 8, 32, 4

    key = jax.random.PRNGKey(0)
    kp, kq, kk, kv, km, km2 = jax.random.split(key, 6)

    mha = MultiHeadAttentionPallas(E, H, kp)

    q = jax.random.normal(kq, (B, S, E), jnp.float32)
    k = jax.random.normal(kk, (B, S, E), jnp.float32)
    v = jax.random.normal(kv, (B, S, E), jnp.float32)
    # additive attention-bias masks (pre-softmax and post-softmax), per batch
    mask = jax.random.normal(km, (B, S, S), jnp.float32)
    mask2 = 0.1 * jax.random.normal(km2, (B, S, S), jnp.float32)

    # Tolerance relaxed vs 1e-5 because the softmax denominator now uses the
    # EUP approximate reciprocal (~2e-4 rel err).
    TOL = 2e-3

    # General path: distinct q / k / v.
    fwd = jax.jit(lambda q, k, v, m, m2: mha(q, k, v, m, m2))
    out = jax.block_until_ready(fwd(q, k, v, mask, mask2))
    ref = reference(mha, q, k, v, mask, mask2)
    np.testing.assert_allclose(np.asarray(out), np.asarray(ref), rtol=TOL, atol=TOL)

    # Fused self-attention path (q is k is v): one (E, 3E) projection call.
    fwd_sa = jax.jit(mha.self_attention)
    out_sa = jax.block_until_ready(fwd_sa(q, mask, mask2))
    ref_sa = reference(mha, q, q, q, mask, mask2)
    np.testing.assert_allclose(np.asarray(out_sa), np.asarray(ref_sa),
                               rtol=TOL, atol=TOL)

    print("KERNEL_OK")
</pallas_src>

<mosaic_0001>
module attributes {stable_mosaic.version = 11 : i64} {
  func.func @_linear_relu_kernel(%arg0: i32, %arg1: i32, %arg2: i32, %arg3: memref<16x32xf32, #tpu.memory_space<vmem>>, %arg4: memref<32x32xf32, #tpu.memory_space<vmem>>, %arg5: memref<1x32xf32, #tpu.memory_space<vmem>>, %arg6: memref<16x32xf32, #tpu.memory_space<vmem>>, %arg7: memref<16x32xf32, #tpu.memory_space<vmem>>) attributes {dimension_semantics = [#tpu.dimension_semantics<parallel>, #tpu.dimension_semantics<parallel>, #tpu.dimension_semantics<arbitrary>], iteration_bounds = array<i64: 1, 1, 1>, scalar_prefetch = 0 : i64, scratch_operands = 1 : i64, tpu.core_type = #tpu.core_type<tc>, window_params = [{transform_indices = @transform_0, window_bounds = array<i64: 16, 32>}, {transform_indices = @transform_1, window_bounds = array<i64: 32, 32>}, {transform_indices = @transform_2, window_bounds = array<i64: 1, 32>}, {transform_indices = @transform_3, window_bounds = array<i64: 16, 32>}]} {
    %c0_i32 = arith.constant 0 : i32
    %0 = arith.cmpi eq, %arg2, %c0_i32 : i32
    %1 = arith.extui %0 : i1 to i32
    %c0_i32_0 = arith.constant 0 : i32
    %2 = arith.cmpi ne, %1, %c0_i32_0 : i32
    scf.if %2 {
      %cst_10 = arith.constant 0.000000e+00 : f32
      %12 = vector.broadcast %cst_10 : f32 to vector<16x32xf32>
      %c0_11 = arith.constant 0 : index
      %c0_12 = arith.constant 0 : index
      %13 = vector.load %arg7[%c0_11, %c0_12] : memref<16x32xf32, #tpu.memory_space<vmem>>, vector<16x32xf32>
      tpu.vector_store %arg7[%c0_11, %c0_12], %12 {strides = array<i32>} : memref<16x32xf32, #tpu.memory_space<vmem>>, vector<16x32xf32>,
    } else {
    }
    %c0 = arith.constant 0 : index
    %c0_1 = arith.constant 0 : index
    %3 = vector.load %arg7[%c0, %c0_1] : memref<16x32xf32, #tpu.memory_space<vmem>>, vector<16x32xf32>
    %c0_2 = arith.constant 0 : index
    %c0_3 = arith.constant 0 : index
    %4 = vector.load %arg3[%c0_2, %c0_3] : memref<16x32xf32, #tpu.memory_space<vmem>>, vector<16x32xf32>
    %c0_4 = arith.constant 0 : index
    %c0_5 = arith.constant 0 : index
    %5 = vector.load %arg4[%c0_4, %c0_5] : memref<32x32xf32, #tpu.memory_space<vmem>>, vector<32x32xf32>
    %cst = arith.constant dense<0.000000e+00> : vector<16x32xf32>
    %6 = tpu.matmul %4, %5, %cst {dimension_numbers = #tpu.dot_dimension_numbers<[1], [0], [0], [1], [0, 0, 1, 1], [], []>} : vector<16x32xf32>, vector<32x32xf32>, vector<16x32xf32> -> vector<16x32xf32>
    %7 = arith.addf %3, %6 : vector<16x32xf32>
    %c0_6 = arith.constant 0 : index
    %c0_7 = arith.constant 0 : index
    %8 = vector.load %arg7[%c0_6, %c0_7] : memref<16x32xf32, #tpu.memory_space<vmem>>, vector<16x32xf32>
    tpu.vector_store %arg7[%c0_6, %c0_7], %7 {strides = array<i32>} : memref<16x32xf32, #tpu.memory_space<vmem>>, vector<16x32xf32>,
    %c0_i32_8 = arith.constant 0 : i32
    %9 = arith.cmpi eq, %arg2, %c0_i32_8 : i32
    %10 = arith.extui %9 : i1 to i32
    %c0_i32_9 = arith.constant 0 : i32
    %11 = arith.cmpi ne, %10, %c0_i32_9 : i32
    scf.if %11 {
      %c0_10 = arith.constant 0 : index
      %c0_11 = arith.constant 0 : index
      %12 = vector.load %arg7[%c0_10, %c0_11] : memref<16x32xf32, #tpu.memory_space<vmem>>, vector<16x32xf32>
      %c0_12 = arith.constant 0 : index
      %c0_13 = arith.constant 0 : index
      %13 = vector.load %arg5[%c0_12, %c0_13] : memref<1x32xf32, #tpu.memory_space<vmem>>, vector<1x32xf32>
      %14 = vector.broadcast %13 : vector<1x32xf32> to vector<16x32xf32>
      %15 = arith.addf %12, %14 : vector<16x32xf32>
      %cst_14 = arith.constant 0.000000e+00 : f32
      %16 = vector.broadcast %cst_14 : f32 to vector<16x32xf32>
      %17 = arith.maximumf %15, %16 : vector<16x32xf32>
      %c0_15 = arith.constant 0 : index
      %c0_16 = arith.constant 0 : index
      %18 = vector.load %arg6[%c0_15, %c0_16] : memref<16x32xf32, #tpu.memory_space<vmem>>, vector<16x32xf32>
      tpu.vector_store %arg6[%c0_15, %c0_16], %17 {strides = array<i32>} : memref<16x32xf32, #tpu.memory_space<vmem>>, vector<16x32xf32>,
    } else {
    }
    return
  }
  func.func @transform_0(%arg0: i32, %arg1: i32, %arg2: i32) -> (i32, i32) {
    %c0_i32 = arith.constant 0 : i32
    return %arg0, %arg2 : i32, i32
  }
  func.func @transform_1(%arg0: i32, %arg1: i32, %arg2: i32) -> (i32, i32) {
    %c0_i32 = arith.constant 0 : i32
    return %arg2, %arg1 : i32, i32
  }
  func.func @transform_2(%arg0: i32, %arg1: i32, %arg2: i32) -> (i32, i32) {
    %c0_i32 = arith.constant 0 : i32
    %c0_i32_0 = arith.constant 0 : i32
    return %c0_i32, %arg1 : i32, i32
  }
  func.func @transform_3(%arg0: i32, %arg1: i32, %arg2: i32) -> (i32, i32) {
    %c0_i32 = arith.constant 0 : i32
    return %arg0, %arg1 : i32, i32
  }
}

module attributes {stable_mosaic.version = 11 : i64} {
  func.func @_attn_out_kernel(%arg0: i32, %arg1: i32, %arg2: memref<1x8x32xf32, #tpu.memory_space<vmem>>, %arg3: memref<1x8x32xf32, #tpu.memory_space<vmem>>, %arg4: memref<1x8x32xf32, #tpu.memory_space<vmem>>, %arg5: memref<1x8x8xf32, #tpu.memory_space<vmem>>, %arg6: memref<1x8x8xf32, #tpu.memory_space<vmem>>, %arg7: memref<32x32xf32, #tpu.memory_space<vmem>>, %arg8: memref<1x32xf32, #tpu.memory_space<vmem>>, %arg9: memref<1x8x32xf32, #tpu.memory_space<vmem>>) attributes {dimension_semantics = [#tpu.dimension_semantics<parallel>, #tpu.dimension_semantics<parallel>], iteration_bounds = array<i64: 2, 1>, scalar_prefetch = 0 : i64, scratch_operands = 0 : i64, tpu.core_type = #tpu.core_type<tc>, window_params = [{transform_indices = @transform_0, window_bounds = array<i64: 1, 8, 32>}, {transform_indices = @transform_1, window_bounds = array<i64: 1, 8, 32>}, {transform_indices = @transform_2, window_bounds = array<i64: 1, 8, 32>}, {transform_indices = @transform_3, window_bounds = array<i64: 1, 8, 8>}, {transform_indices = @transform_4, window_bounds = array<i64: 1, 8, 8>}, {pipeline_mode = #tpu.pipeline_mode<synchronous>, transform_indices = @transform_5, window_bounds = array<i64: 32, 32>}, {pipeline_mode = #tpu.pipeline_mode<synchronous>, transform_indices = @transform_6, window_bounds = array<i64: 1, 32>}, {transform_indices = @transform_7, window_bounds = array<i64: 1, 8, 32>}]} {
    %c0 = arith.constant 0 : index
    %c0_0 = arith.constant 0 : index
    %c0_1 = arith.constant 0 : index
    %0 = vector.load %arg2[%c0, %c0_0, %c0_1] : memref<1x8x32xf32, #tpu.memory_space<vmem>>, vector<1x8x32xf32>
    %1 = vector.shape_cast %0 : vector<1x8x32xf32> to vector<8x32xf32>
    %2 = vector.shape_cast %1 : vector<8x32xf32> to vector<8x4x8xf32>
    %c0_2 = arith.constant 0 : index
    %c0_3 = arith.constant 0 : index
    %c0_4 = arith.constant 0 : index
    %3 = vector.load %arg3[%c0_2, %c0_3, %c0_4] : memref<1x8x32xf32, #tpu.memory_space<vmem>>, vector<1x8x32xf32>
    %4 = vector.shape_cast %3 : vector<1x8x32xf32> to vector<8x32xf32>
    %5 = vector.shape_cast %4 : vector<8x32xf32> to vector<8x4x8xf32>
    %c0_5 = arith.constant 0 : index
    %c0_6 = arith.constant 0 : index
    %c0_7 = arith.constant 0 : index
    %6 = vector.load %arg4[%c0_5, %c0_6, %c0_7] : memref<1x8x32xf32, #tpu.memory_space<vmem>>, vector<1x8x32xf32>
    %7 = vector.shape_cast %6 : vector<1x8x32xf32> to vector<8x32xf32>
    %8 = vector.shape_cast %7 : vector<8x32xf32> to vector<8x4x8xf32>
    %cst = arith.constant dense<0.000000e+00> : vector<4x8x8xf32>
    %9 = tpu.matmul %2, %5, %cst {dimension_numbers = #tpu.dot_dimension_numbers<[2], [2], [0], [0], [0, 1, 0, 0, 1, 0], [1], [1]>} : vector<8x4x8xf32>, vector<8x4x8xf32>, vector<4x8x8xf32> -> vector<4x8x8xf32>
    %c0_8 = arith.constant 0 : index
    %c0_9 = arith.constant 0 : index
    %c0_10 = arith.constant 0 : index
    %10 = vector.load %arg5[%c0_8, %c0_9, %c0_10] : memref<1x8x8xf32, #tpu.memory_space<vmem>>, vector<1x8x8xf32>
    %11 = vector.shape_cast %10 : vector<1x8x8xf32> to vector<8x8xf32>
    %12 = vector.shape_cast %11 : vector<8x8xf32> to vector<1x8x8xf32>
    %13 = vector.broadcast %12 : vector<1x8x8xf32> to vector<4x8x8xf32>
    %14 = arith.addf %9, %13 : vector<4x8x8xf32>
    %cst_11 = arith.constant dense<0xFF800000> : vector<4x8xf32>
    %15 = vector.multi_reduction <maximumf>, %14, %cst_11 [2] : vector<4x8x8xf32> to vector<4x8xf32>
    %16 = vector.shape_cast %15 : vector<4x8xf32> to vector<4x8x1xf32>
    %17 = vector.broadcast %16 : vector<4x8x1xf32> to vector<4x8x8xf32>
    %18 = arith.subf %14, %17 : vector<4x8x8xf32>
    %19 = math.exp %18 : vector<4x8x8xf32>
    %cst_12 = arith.constant dense<0.000000e+00> : vector<4x8xf32>
    %20 = vector.multi_reduction <add>, %19, %cst_12 [2] : vector<4x8x8xf32> to vector<4x8xf32>
    %21 = vector.shape_cast %20 : vector<4x8xf32> to vector<4x8x1xf32>
    %22 = tpu.reciprocal %21 {approx = true} : vector<4x8x1xf32> -> vector<4x8x1xf32>
    %23 = vector.broadcast %22 : vector<4x8x1xf32> to vector<4x8x8xf32>
    %24 = arith.mulf %19, %23 : vector<4x8x8xf32>
    %c0_13 = arith.constant 0 : index
    %c0_14 = arith.constant 0 : index
    %c0_15 = arith.constant 0 : index
    %25 = vector.load %arg6[%c0_13, %c0_14, %c0_15] : memref<1x8x8xf32, #tpu.memory_space<vmem>>, vector<1x8x8xf32>
    %26 = vector.shape_cast %25 : vector<1x8x8xf32> to vector<8x8xf32>
    %27 = vector.shape_cast %26 : vector<8x8xf32> to vector<1x8x8xf32>
    %28 = vector.broadcast %27 : vector<1x8x8xf32> to vector<4x8x8xf32>
    %29 = arith.addf %24, %28 : vector<4x8x8xf32>
    %cst_16 = arith.constant 0.000000e+00 : f32
    %30 = vector.broadcast %cst_16 : f32 to vector<4x8x8xf32>
    %31 = arith.maximumf %29, %30 : vector<4x8x8xf32>
    %cst_17 = arith.constant dense<0.000000e+00> : vector<4x8x8xf32>
    %32 = tpu.matmul %31, %8, %cst_17 {dimension_numbers = #tpu.dot_dimension_numbers<[2], [0], [1], [2], [0, 0, 0, 1, 1, 2], [0], [1]>} : vector<4x8x8xf32>, vector<8x4x8xf32>, vector<4x8x8xf32> -> vector<4x8x8xf32>
    %33 = tpu.transpose %32, [1, 0, 2] : vector<4x8x8xf32> -> vector<8x4x8xf32>
    %34 = vector.shape_cast %33 : vector<8x4x8xf32> to vector<8x32xf32>
    %c0_18 = arith.constant 0 : index
    %c0_19 = arith.constant 0 : index
    %35 = vector.load %arg7[%c0_18, %c0_19] : memref<32x32xf32, #tpu.memory_space<vmem>>, vector<32x32xf32>
    %cst_20 = arith.constant dense<0.000000e+00> : vector<8x32xf32>
    %36 = tpu.matmul %34, %35, %cst_20 {dimension_numbers = #tpu.dot_dimension_numbers<[1], [0], [0], [1], [0, 0, 1, 1], [], []>} : vector<8x32xf32>, vector<32x32xf32>, vector<8x32xf32> -> vector<8x32xf32>
    %c0_21 = arith.constant 0 : index
    %c0_22 = arith.constant 0 : index
    %37 = vector.load %arg8[%c0_21, %c0_22] : memref<1x32xf32, #tpu.memory_space<vmem>>, vector<1x32xf32>
    %38 = vector.broadcast %37 : vector<1x32xf32> to vector<8x32xf32>
    %39 = arith.addf %36, %38 : vector<8x32xf32>
    %cst_23 = arith.constant 0.000000e+00 : f32
    %40 = vector.broadcast %cst_23 : f32 to vector<8x32xf32>
    %41 = arith.maximumf %39, %40 : vector<8x32xf32>
    %c0_24 = arith.constant 0 : index
    %c0_25 = arith.constant 0 : index
    %c0_26 = arith.constant 0 : index
    %42 = vector.load %arg9[%c0_24, %c0_25, %c0_26] : memref<1x8x32xf32, #tpu.memory_space<vmem>>, vector<1x8x32xf32>
    %43 = vector.shape_cast %42 : vector<1x8x32xf32> to vector<8x32xf32>
    %44 = vector.shape_cast %41 : vector<8x32xf32> to vector<1x8x32xf32>
    tpu.vector_store %arg9[%c0_24, %c0_25, %c0_26], %44 {strides = array<i32>} : memref<1x8x32xf32, #tpu.memory_space<vmem>>, vector<1x8x32xf32>,
    return
  }
  func.func @transform_0(%arg0: i32, %arg1: i32) -> (i32, i32, i32) {
    %c0_i32 = arith.constant 0 : i32
    %c0_i32_0 = arith.constant 0 : i32
    return %arg0, %arg1, %c0_i32 : i32, i32, i32
  }
  func.func @transform_1(%arg0: i32, %arg1: i32) -> (i32, i32, i32) {
    %c0_i32 = arith.constant 0 : i32
    %c0_i32_0 = arith.constant 0 : i32
    %c0_i32_1 = arith.constant 0 : i32
    return %arg0, %c0_i32, %c0_i32_0 : i32, i32, i32
  }
  func.func @transform_2(%arg0: i32, %arg1: i32) -> (i32, i32, i32) {
    %c0_i32 = arith.constant 0 : i32
    %c0_i32_0 = arith.constant 0 : i32
    %c0_i32_1 = arith.constant 0 : i32
    return %arg0, %c0_i32, %c0_i32_0 : i32, i32, i32
  }
  func.func @transform_3(%arg0: i32, %arg1: i32) -> (i32, i32, i32) {
    %c0_i32 = arith.constant 0 : i32
    %c0_i32_0 = arith.constant 0 : i32
    return %arg0, %arg1, %c0_i32 : i32, i32, i32
  }
  func.func @transform_4(%arg0: i32, %arg1: i32) -> (i32, i32, i32) {
    %c0_i32 = arith.constant 0 : i32
    %c0_i32_0 = arith.constant 0 : i32
    return %arg0, %arg1, %c0_i32 : i32, i32, i32
  }
  func.func @transform_5(%arg0: i32, %arg1: i32) -> (i32, i32) {
    %c0_i32 = arith.constant 0 : i32
    %c0_i32_0 = arith.constant 0 : i32
    %c0_i32_1 = arith.constant 0 : i32
    return %c0_i32, %c0_i32_0 : i32, i32
  }
  func.func @transform_6(%arg0: i32, %arg1: i32) -> (i32, i32) {
    %c0_i32 = arith.constant 0 : i32
    %c0_i32_0 = arith.constant 0 : i32
    %c0_i32_1 = arith.constant 0 : i32
    return %c0_i32, %c0_i32_0 : i32, i32
  }
  func.func @transform_7(%arg0: i32, %arg1: i32) -> (i32, i32, i32) {
    %c0_i32 = arith.constant 0 : i32
    %c0_i32_0 = arith.constant 0 : i32
    return %arg0, %arg1, %c0_i32 : i32, i32, i32
  }
}

</mosaic_0001>

<bundles_post_ra>
// kernel: _lambda_.4
= control target key start
LH: loop header
LB: loop body
LE: loop exit
PB: predicated region body
PF: predicated region fallthrough
CT: control target
= control target key end

     0   :  { %8 = vsyncpa [#allocation4], 0  ;;  %s228_s0 = inlined_call_operand.hbm [shape: f32[16,32], index: 0, kind: input, shape index: {}]   ;;  %s229_s1 = inlined_call_operand.hbm [shape: f32[32,32], index: 1, kind: input, shape index: {}]   ;;  %s230_s2 = inlined_call_operand.vmem [shape: f32[1,32], index: 2, kind: input, shape index: {}]   ;;  %s231_s3 = inlined_call_operand.vmem [shape: f32[16,32], index: 3, kind: output, shape index: {}]  }
   0x1   :  { %s14_s14 = sshll.u32 %s228_s0, 4  ;;  %s15_s14 = int_to_ptr.hbm [resolvable:$true] %s14_s14 }
   0x2   :  { %9 = vsyncpa [#allocation6], 0  ;;  %s180_s15 = smov [#allocation3]   ;;  %s27_s19 = sshll.u32 %s229_s1, 4  ;;  %s28_s19 = int_to_ptr.hbm [resolvable:$true] %s27_s19 }
   0x3   :  { %s16_s16 = sshll.u32 %s180_s15, 4  ;;  %s181_s20 = smov 128   ;;  %s17_s16 = int_to_ptr.vmem [resolvable:$true] %s16_s16 }
   0x4   :  { %s182_s21 = smov 8   ;;  %s183_s22 = smov [#allocation5]  }
   0x5   :  { %22 = dma.hbm_to_vmem [thread:$0]  %s15_s14, 256, %s17_s16, [#allocation4], %s181_s20, %s181_s20, %s182_s21  }
   0x6   :  { %s29_s23 = sshll.u32 %s183_s22, 4  ;;  %s30_s23 = int_to_ptr.vmem [resolvable:$true] %s29_s23 }
   0x7   :  { %35 = dma.hbm_to_vmem [thread:$0]  %s28_s19, 512, %s30_s23, [#allocation6], %s181_s20, %s181_s20, %s182_s21  }
   0x8   :  { %176 = dma.done.wait [#allocation4], 256  }
   0x9   :  { %177 = vsyncadd [#allocation4], 4294967040 }
   0xa   :  { %178 = dma.done.wait [#allocation6], 512  }
   0xb   :  { %179 = vsyncadd [#allocation6], 4294966784  ;;  %vm50_vm0 = vcmask 261120   ;;  %v184_v0 = vmov 0.0   ;;  %v60_v1 = vld [vmem:[#allocation5 + $0x18] sm:$0xff]  ;;  %v59_v2 = vld [vmem:[#allocation5 + $0x10] sm:$0xff] }
   0xc   :  { %51 = vst.msk [vmem:[#allocation2] sm:$0xff] %vm50_vm0, %v184_v0  ;;  %80 = vmatpush.msra.mxu0 %v60_v1  ;;  %118 = vmatpush.msra.mxu1 %v60_v1  ;;  %v58_v3 = vld [vmem:[#allocation5 + $0x8] sm:$0xff]  ;;  %v57_v4 = vld [vmem:[#allocation5] sm:$0xff]  ;;  %v55_v5 = vld [vmem:[#allocation3] sm:$0xff] }
   0xd   :  { %52 = vst.msk [vmem:[#allocation2 + $0x8] sm:$0xff] %vm50_vm0, %v184_v0  ;;  %v56_v6 = vld [vmem:[#allocation3 + $0x8] sm:$0xff]  ;;  %v127_v13 = vld [vmem:[%s230_s2] ss:$0 sm:$0xff] }
   0xe   :  { %81 = vmatpush.msra.mxu0 %v59_v2  ;;  %119 = vmatpush.msra.mxu1 %v59_v2 }
  0x10   :  { %82 = vmatpush.msra.mxu0 %v58_v3  ;;  %120 = vmatpush.msra.mxu1 %v58_v3 }
  0x12   :  { %83 = vmatpush.msra.mxu0 %v57_v4  ;;  %121 = vmatpush.msra.mxu1 %v57_v4 }
  0x13   :  { %116 = vmatmul.msk.f32.vlgmr.msra.gmra.mxu0 %vm50_vm0, %v55_v5  ;;  %117 = vmatmul.msk.f32.vlgmr.msra.gmra.mxu1 %vm50_vm0, %v56_v6  ;;  %v53_v7 = vld [vmem:[#allocation2] sm:$0xff] }
  0x14   :  { %v54_v8 = vld [vmem:[#allocation2 + $0x8] sm:$0xff] }
  0x90   :  { %v85_v9 = vpop.f32.mrf.mxu0  ;;  %v88_v10 = vpop.f32.mrf.mxu1 }
  0x91   :  { %v91_v11 = vadd.f32 %v85_v9, %v53_v7  ;;  %v92_v12 = vadd.f32 %v88_v10, %v54_v8 }
  0x93   :  { %93 = vst.msk [vmem:[#allocation2] sm:$0xff] %vm50_vm0, %v91_v11 }
  0x94   :  { %94 = vst.msk [vmem:[#allocation2 + $0x8] sm:$0xff] %vm50_vm0, %v92_v12 }
  0x9a   :  { %v98_v14 = vld [vmem:[#allocation2] sm:$0xff] }
  0x9b   :  { %v104_v15 = vadd.f32 %v127_v13, %v98_v14  ;;  %v99_v16 = vld [vmem:[#allocation2 + $0x8] sm:$0xff] }
  0x9c   :  { %v105_v17 = vadd.f32 %v127_v13, %v99_v16 }
  0x9d   :  { %v106_v18 = vmax.f32 %v104_v15, 0.0 }
  0x9e   :  { %v107_v19 = vmax.f32 %v105_v17, 0.0 }
  0x9f   :  { %108 = vst.msk [vmem:[%s231_s3] sm:$0xff] %vm50_vm0, %v106_v18 }
  0xa0   :  { %109 = vst.msk [vmem:[%s231_s3 + $0x8] sm:$0xff] %vm50_vm0, %v107_v19 }
  0xa1   :  { %114 = vsyncpa [#allocation4], 1 }
  0xa2   :  { %115 = vsyncpa [#allocation6], 1 }

// kernel: _lambda_.7
= control target key start
LH: loop header
LB: loop body
LE: loop exit
PB: predicated region body
PF: predicated region fallthrough
CT: control target
= control target key end

     0   :  { %s2864_s0 = inlined_call_operand.vmem [shape: f32[2,8,32], index: 0, kind: input, shape index: {}]   ;;  %s2865_s1 = inlined_call_operand.vmem [shape: f32[2,8,32], index: 1, kind: input, shape index: {}]   ;;  %s2866_s2 = inlined_call_operand.vmem [shape: f32[2,8,32], index: 2, kind: input, shape index: {}]   ;;  %s2867_s3 = inlined_call_operand.hbm [shape: f32[2,8,8], index: 3, kind: input, shape index: {}]   ;;  %s2868_s4 = inlined_call_operand.hbm [shape: f32[2,8,8], index: 4, kind: input, shape index: {}]   ;;  %s2869_s5 = inlined_call_operand.hbm [shape: f32[32,32], index: 5, kind: input, shape index: {}]   ;;  %s2870_s6 = inlined_call_operand.vmem [shape: f32[1,32], index: 6, kind: input, shape index: {}]   ;;  %s2871_s7 = inlined_call_operand.hbm [shape: f32[2,8,32], index: 7, kind: output, shape index: {}]  }
   0x1   :  { %2879 = sst [smem:[#allocation20_spill]] %s2869_s5 }
   0x2   :  { %12 = vsyncpa [#allocation3], 0 }
   0x3   :  { %14 = vsyncpa [#allocation3 + $0x1], 0 }
   0x4   :  { %15 = vsyncpa [#allocation6], 0 }
   0x5   :  { %17 = vsyncpa [#allocation6 + $0x1], 0 }
   0x6   :  { %18 = vsyncpa [#allocation4], 0 }
   0x7   :  { %20 = vsyncpa [#allocation4 + $0x1], 0  ;;  %s2417_s24 = smov 0   ;;  %s2419_s25 = smov 0  }
   0x8   :  { %s2421_s26 = smov 0   ;;  %s2423_s27 = smov 0  }
   0x9   :  { %s2425_s28 = smov 0   ;;  %s2427_s29 = smov 0  }
   0xa LB: > { %2880 = sst [smem:[#allocation13_spill]] %s2344_s24  ;;  %s2448_s30 = sadd.s32 4294967295, %s2364_s29   ;;  %s2364_s29 = sphi %s2427_s29, %s26_s29   ;;  %s2360_s28 = sphi %s2425_s28, %s2903_s28   ;;  %s2356_s27 = sphi %s2423_s27, %s2898_s27   ;;  %s2352_s26 = sphi %s2421_s26, %s2902_s26   ;;  %s2348_s25 = sphi %s2419_s25, %s2901_s25   ;;  %s2344_s24 = sphi %s2417_s24, %s2900_s24  }
   0xb   : > { %2881 = sst [smem:[#allocation14_spill]] %s2352_s26  ;;  %p1994_p0 = scmp.ge.s32.totalorder %s2364_s29, 1 }
   0xc   : > { %2882 = sst [smem:[#allocation15_spill]] %s2360_s28  ;;  %p141_p1 = scmp.eq.s32.totalorder %s2448_s30, 0 }
   0xd   : > { %p249_p2 = scmp.lt.s32.totalorder %s2364_s29, 3  ;;  %s2883_s5 = sld [smem:[#allocation20_spill]] }
   0xe   : > { %s2366_s12 = smov [#allocation7]   ;;  %p1996_p6 = scmp.ge.s32.totalorder %s2364_s29, 2 }
   0xf   : > { %p2456_p3 = pnand %p1994_p0, %p249_p2  ;;  %s262_s13 = sshll.u32 %s2366_s12, 4  ;;  %s263_s13 = int_to_ptr.vmem [resolvable:$true] %s262_s13 }
  0x10   : > { %s2367_s14 = smov 128   ;;  %s2368_s15 = smov 8  }
  0x11   : > { %p2032_p4 = pneg %p2456_p3  ;;  %s1993_s16 = sadd.s32 4294967294, %s2364_s29  }
  0x12   : > { %s38_s17 = sadd.s32 1, %s2360_s28  ;;  %s127_s18 = sadd.s32 1, %s2352_s26 }
  0x13   : > { %s260_s10 = sshll.u32 %s2883_s5, 4  ;;  %p2033_p5 = pnand %p2032_p4, %p141_p1  ;;  %s261_s10 = int_to_ptr.hbm [resolvable:$true] %s260_s10 }
  0x14   : > { %p40_p7 = scmp.ge.s32.totalorder %s38_s17, 2  ;;  %p134_p8 = scmp.ne.s32.totalorder %s2352_s26, %s2348_s25 }
  0x15   : > { %2035 = dma.hbm_to_vmem [thread:$0]  (!%p2033_p5), %s261_s10, 512, %s263_s13, [#allocation6], %s2367_s14, %s2367_s14, %s2368_s15  }
  0x16   : > { %p135_p9 = scmp.eq.s32.totalorder %s2364_s29, 0  ;;  %p140_p10 = scmp.ne.s32.totalorder %s2348_s25, %s2344_s24 }
  0x17   : > { %s2905_s17 = smov (%p40_p7, %s38_s17), 0  ;;  %p236_p13 = scmp.eq.s32.totalorder %s2448_s30, 1 }
  0x18   : > { %2885 = sst [smem:[#allocation16_spill]] %s2905_s17  ;;  %p2475_p11 = por %p135_p9, %p134_p8 }
  0x19   : > { %p2481_p12 = por %p141_p1, %p140_p10  ;;  %s122_s21 = ssub.s32 %s2360_s28, %s2905_s17 }
  0x1a   : > { %p125_p0 = scmp.eq.s32.totalorder %s122_s21, 0  ;;  %p242_p2 = scmp.eq.s32.totalorder %s1993_s16, 1 }
  0x1b   : > { %p2488_p4 = por %p236_p13, %p134_p8  ;;  %p2048_p5 = scmp.lt.s32.totalorder %s2364_s29, 2 }
  0x1c   : > { %s2494_s23 = scalar_select %p125_p0, %s2352_s26, %s127_s18  }
  0x1d   : > { %s2888_s22 = scalar_select %p2488_p4, 1, 0 }
  0x1e   : > { %2890 = sst [smem:[#allocation18_spill]] %s2494_s23  ;;  %p2496_p7 = por %p242_p2, %p140_p10 }
  0x1f   : > { %2889 = sst [smem:[#allocation17_spill]] %s2888_s22  ;;  %s303_s9 = sand.u32 1, %s2352_s26  }
  0x20   : > { %s2891_s8 = scalar_select %p2496_p7, 1, 0 }
  0x21   : > { %s1997_s10 = sshll.u32 %s303_s9, 3  ;;  %s1998_s12 = sshll.u32 %s2360_s28, 3 }
  0x22   : > { %2892 = sst [smem:[#allocation19_spill]] %s2891_s8  ;;  %s312_s15 = scalar_lea.hbm %s2867_s3, %s1998_s12 }
  0x23   : > { %s307_s16 = scalar_lea.vmem [#allocation2], %s1997_s10  ;;  %s314_s5 = sshll.u32 %s312_s15, 4  ;;  %s315_s5 = int_to_ptr.hbm [resolvable:$true] %s314_s5 }
  0x24   : > { %s316_s21 = sshll.u32 %s307_s16, 4  ;;  %p2037_p8 = pnand %p2048_p5, %p2475_p11  ;;  %s317_s21 = int_to_ptr.vmem [resolvable:$true] %s316_s21 }
  0x25   : > { %s332_s23 = scalar_lea.hbm %s2868_s4, %s1998_s12  ;;  %s323_s24 = sand.u32 1, %s2364_s29  }
  0x26   : > { %s304_s8 = scalar_lea.sflag [#allocation3], %s303_s9  ;;  %s334_s26 = sshll.u32 %s332_s23, 4  ;;  %s335_s26 = int_to_ptr.hbm [resolvable:$true] %s334_s26 }
  0x27   : > { %2039 = dma.hbm_to_vmem [thread:$0]  (!%p2037_p8), %s315_s5, 128, %s317_s21, %s304_s8  }
  0x28   : > { %s327_s28 = scalar_lea.vmem [#allocation5], %s1997_s10  ;;  %s324_s13 = scalar_lea.sflag [#allocation6], %s323_s24 }
  0x29   : > { %s336_s22 = sshll.u32 %s327_s28, 4  ;;  %345 = sbr.rel (%p2456_p3) target bundleno = 1372 (0x55c), region = 48  ;;  %s337_s22 = int_to_ptr.vmem [resolvable:$true] %s336_s22 }
  0x2a   : > { %2042 = dma.hbm_to_vmem [thread:$0]  (!%p2037_p8), %s335_s26, 128, %s337_s22, %s324_s13  }
  0x2b   : > { %s2514_s19 = sand.u32 (!%p2456_p3), 1, %s2348_s25  }
  0x2c   : > { %s2517_s17 = sshll.u32 (!%p2456_p3), %s2514_s19, 3  ;;  %s348_s5 = scalar_lea.sflag (!%p2456_p3), [#allocation3], %s2514_s19 }
  0x2d   : > { %s351_s23 = scalar_lea.vmem (!%p2456_p3), [#allocation2], %s2517_s17 }
  0x2e   : > { %2327 = dma.done.wait (%p2481_p12), %s348_s5, 128  }
  0x2f   : > { %2329 = vsyncadd (%p2481_p12), %s348_s5, 4294967168  ;;  %s357_s24 = sand.u32 1, %s2448_s30   ;;  %s361_s28 = scalar_lea.vmem [#allocation5], %s2517_s17 }
  0x30   : > { %s358_s26 = scalar_lea.sflag [#allocation6], %s357_s24 }
  0x31   : > { %2331 = dma.done.wait (%p2481_p12), %s358_s26, 128  }
  0x32   : > { %2333 = vsyncadd (%p2481_p12), %s358_s26, 4294967168 }
  0x33   : > { %2335 = dma.done.wait (%p141_p1), [#allocation6], 512  }
  0x34   : > { %2337 = vsyncadd (%p141_p1), [#allocation6], 4294966784  ;;  %p418_p3 = scmp.lt.s32.totalorder %s2356_s27, 1  ;;  %s2369_s15 = smov 120   ;;  %v2372_v2 = vmov 1983009808  }
  0x35   : > { %s2370_s30 = smov 112   ;;  %s2371_s16 = smov 104   ;;  %v450_v3 = vunpack.c.l.s4 %v2372_v2  ;;  %vm445_vm0 = vcmask 1047556   ;;  %v2373_v17 = vmov 1934713408   ;;  %vm1370_vm1 = vcmask 64512  }
  0x36   : > { %s419_s11 = scalar_select %p418_p3, %s2356_s27, 1  ;;  %v474_v18 = vunpack.c.l.s4 %v2373_v17  ;;  %vm1785_vm2 = vcmask 130048   ;;  %vm1787_vm3 = vcmask 195584   ;;  %vm1797_vm4 = vcmask 261120  }
  0x37   : > { %v2558_v8 = vunpack.c.0.s8 %v450_v3  ;;  %s2374_s5 = smov 24   ;;  %s2376_s24 = smov 8  }
  0x38   : > { %s2537_s22 = sshll.u32 %s419_s11, 3  ;;  %v2568_v25 = vunpack.c.0.s8 %v474_v18  ;;  %s2019_s26 = sshll.u32 %s2356_s27, 3 }
  0x39   : > { %s428_s10 = scalar_lea.vmem %s2865_s1, %s2537_s22  ;;  %s424_s14 = scalar_lea.vmem %s2864_s0, %s2537_s22 }
  0x3a   : > { %v501_v0 = vld [vmem:[%s428_s10] sm:$0xff]  ;;  %s432_s13 = scalar_lea.vmem %s2866_s2, %s2537_s22  ;;  %s1835_s10 = scalar_lea.hbm %s2871_s7, %s2019_s26 }
  0x3b   : > { %503 = vrot.lane.b32.xlu0 %v501_v0, %s2369_s15  ;;  %506 = vrot.lane.b32.xlu1 %v501_v0, %s2370_s30  ;;  %v2549_v1 = vld [vmem:[%s424_s14] sm:$0xff]  ;;  %v514_v6 = vrot.slane %v501_v0, 4  ;;  %s417_s20 = scalar_lea.vmem [#allocation8], %s2517_s17  ;;  %s1839_s14 = sshll.u32 %s1835_s10, 4  ;;  %s1840_s14 = int_to_ptr.hbm [resolvable:$true] %s1839_s14 }
  0x3c   : > { %438 = vrot.lane.b32.xlu2 %v2549_v1, %s2370_s30  ;;  %s1837_s12 = sshll.u32 %s417_s20, 4  ;;  %s1824_s27 = scalar_lea.sflag [#allocation4], %s2514_s19  ;;  %s1838_s12 = int_to_ptr.vmem [resolvable:$true] %s1837_s12 }
  0x3d   : > { %s2294_s17 = scalar_lea.hbm %s2871_s7, 16 }
  0x43   : > { %509 = vrot.lane.b32.xlu0 %v501_v0, %s2371_s16  ;;  %435 = vrot.lane.b32.xlu1 %v2549_v1, %s2369_s15 }
  0x44   : > { %441 = vrot.lane.b32.xlu2 %v2549_v1, %s2371_s16 }
  0x96   : > { %v2582_v47 = vpop.permute.xlu2 %438 }
  0x9e   : > { %v2584_v48 = vpop.permute.xlu2 %441 }
  0xad   : > { %v504_v4 = vpop.permute.xlu0 %503  ;;  %v507_v5 = vpop.permute.xlu1 %506 }
  0xae   : > { %v512_v7 = vrot.slane %v507_v5, 4  ;;  %v515_v10 = vsel %vm445_vm0, %v507_v5, %v514_v6  ;;  %v526_v12 = vrot.slane %v504_v4, 4 }
  0xaf   : > { %v523_v13 = vperm.slane %v515_v10, %v2558_v8 }
  0xb0   : > { %v513_v9 = vsel %vm445_vm0, %v512_v7, %v501_v0 }
  0xb1   : > { %v519_v11 = vperm.slane %v513_v9, %v2558_v8  ;;  %v550_v21 = vrot.slane %v523_v13, 4 }
  0xb3   : > { %v538_v20 = vrot.slane %v519_v11, 4 }
  0xb5   : > { %v510_v14 = vpop.permute.xlu0 %509  ;;  %v2586_v50 = vpop.permute.xlu1 %435 }
  0xb6   : > { %v524_v15 = vrot.slane %v510_v14, 4  ;;  %v527_v16 = vsel %vm445_vm0, %v510_v14, %v526_v12 }
  0xb7   : > { %v535_v19 = vperm.slane %v527_v16, %v2558_v8 }
  0xb8   : > { %v525_v22 = vsel %vm445_vm0, %v524_v15, %v504_v4 }
  0xb9   : > { %v531_v23 = vperm.slane %v525_v22, %v2558_v8  ;;  %v548_v24 = vrot.slane %v535_v19, 4  ;;  %v551_v30 = vsel %vm445_vm0, %v535_v19, %v550_v21 }
  0xba   : > { %v559_v35 = vperm.slane %v551_v30, %v2568_v25 }
  0xbb   : > { %v536_v26 = vrot.slane %v531_v23, 4  ;;  %v549_v27 = vsel %vm445_vm0, %v548_v24, %v523_v13  ;;  %v539_v28 = vsel %vm445_vm0, %v531_v23, %v538_v20 }
  0xbc   : > { %v555_v29 = vperm.slane %v549_v27, %v2568_v25  ;;  %v547_v32 = vperm.slane %v539_v28, %v2568_v25  ;;  %v566_v43 = vrot.slane %v559_v35, 4 }
  0xbd   : > { %v537_v31 = vsel %vm445_vm0, %v536_v26, %v519_v11 }
  0xbe   : > { %v543_v33 = vperm.slane %v537_v31, %v2568_v25  ;;  %v564_v34 = vrot.slane %v555_v29, 4  ;;  %v562_v40 = vrot.slane %v547_v32, 4  ;;  %v567_v45 = vsel %vm445_vm0, 0.0, %v566_v43 }
  0xc0   : > { %v2111_v36 = vpack.i.bf16 %v543_v33, %v555_v29  ;;  %v565_v37 = vsel %vm445_vm0, 0.0, %v564_v34  ;;  %v560_v38 = vrot.slane %v543_v33, 4  ;;  %v563_v44 = vsel %vm445_vm0, 0.0, %v562_v40 }
  0xc1   : > { %v2118_v39 = vpack.i.bf16 %v559_v35, %v565_v37  ;;  %v2132_v46 = vpack.i.bf16 %v563_v44, %v567_v45 }
  0xc2   : > { %2112 = vxpose.xlu0.b32.start.end [1/1] (short) (narrow) %v2111_v36, 8  ;;  %v561_v41 = vsel %vm445_vm0, 0.0, %v560_v38 }
  0xc3   : > { %2119 = vxpose.xlu1.b32.start.end [1/1] (short) (narrow) %v2118_v39, 8  ;;  %v2125_v42 = vpack.i.bf16 %v547_v32, %v561_v41 }
  0xc5   : > { %2126 = vxpose.xlu2.b32.start.end [1/1] (short) (narrow) %v2125_v42, 8 }
  0xca   : > { %2133 = vxpose.xlu0.b32.start.end [1/1] (short) (narrow) %v2132_v46, 8 }
 0x15e   : > { %v2127_v49 = vpop.trf.xlu2 }
 0x15f   : > { %v2131_v51 = vunpack.i.h.bf16 %v2127_v49  ;;  %v2128_v56 = vunpack.i.l.bf16 %v2127_v49 }
 0x161   : > { %v946_v58 = vrot.slane %v2131_v51, 4  ;;  %v960_v3 = vrot.slane %v2128_v56, 4 }
 0x166   : > { %v2113_v52 = vpop.trf.xlu0 }
 0x167   : > { %v2117_v53 = vunpack.i.h.bf16 %v2113_v52  ;;  %v2114_v54 = vunpack.i.l.bf16 %v2113_v52  ;;  %v2120_v55 = vpop.trf.xlu1 }
 0x168   : > { %v2124_v57 = vunpack.i.h.bf16 %v2120_v55  ;;  %v2121_v61 = vunpack.i.l.bf16 %v2120_v55 }
 0x169   : > { %v948_v59 = vrot.slane %v2117_v53, 4  ;;  %v972_v60 = vrot.slane %v2114_v54, 4  ;;  %v947_v4 = vsel %vm445_vm0, %v946_v58, %v2117_v53 }
 0x16a   : > { %v970_v62 = vrot.slane %v2124_v57, 4  ;;  %v984_v5 = vrot.slane %v2121_v61, 4  ;;  %v953_v13 = vperm.slane %v947_v4, %v2558_v8 }
 0x16b   : > { %v949_v63 = vsel %vm445_vm0, %v2131_v51, %v948_v59  ;;  %v973_v0 = vsel %vm445_vm0, %v2124_v57, %v972_v60 }
 0x16c   : > { %v971_v2 = vsel %vm445_vm0, %v970_v62, %v2114_v54  ;;  %v981_v7 = vperm.slane %v973_v0, %v2558_v8  ;;  %v957_v10 = vperm.slane %v949_v63, %v2558_v8  ;;  %v996_v33 = vrot.slane %v953_v13, 4 }
 0x16d   : > { %v977_v6 = vperm.slane %v971_v2, %v2558_v8 }
 0x16e   : > { %v2134_v9 = vpop.trf.xlu0  ;;  %v1008_v20 = vrot.slane %v957_v10, 4  ;;  %v1032_v23 = vrot.slane %v981_v7, 4 }
 0x16f   : > { %v2138_v11 = vunpack.i.h.bf16 %v2134_v9  ;;  %v2135_v12 = vunpack.i.l.bf16 %v2134_v9  ;;  %v1020_v24 = vrot.slane %v977_v6, 4 }
 0x171   : > { %v958_v14 = vrot.slane %v2138_v11, 4  ;;  %v961_v15 = vsel %vm445_vm0, %v2138_v11, %v960_v3  ;;  %v982_v16 = vrot.slane %v2135_v12, 4  ;;  %v985_v17 = vsel %vm445_vm0, %v2135_v12, %v984_v5 }
 0x172   : > { %v969_v18 = vperm.slane %v961_v15, %v2558_v8  ;;  %v993_v19 = vperm.slane %v985_v17, %v2558_v8  ;;  %v447_v11 = vrot.slane %v2549_v1, 4  ;;  %v459_v15 = vrot.slane %v2586_v50, 4 }
 0x173   : > { %v959_v21 = vsel %vm445_vm0, %v958_v14, %v2128_v56  ;;  %v983_v22 = vsel %vm445_vm0, %v982_v16, %v2121_v61 }
 0x174   : > { %v989_v26 = vperm.slane %v983_v22, %v2558_v8  ;;  %v1030_v27 = vrot.slane %v993_v19, 4  ;;  %v1006_v28 = vrot.slane %v969_v18, 4  ;;  %v1009_v29 = vsel %vm445_vm0, %v969_v18, %v1008_v20 }
 0x175   : > { %v1017_v30 = vperm.slane %v1009_v29, %v2568_v25  ;;  %v1033_v31 = vsel %vm445_vm0, %v993_v19, %v1032_v23  ;;  %v965_v32 = vperm.slane %v959_v21, %v2558_v8  ;;  %v448_v14 = vsel %vm445_vm0, %v2582_v47, %v447_v11 }
 0x176   : > { %v1007_v34 = vsel %vm445_vm0, %v1006_v28, %v957_v10  ;;  %v1031_v35 = vsel %vm445_vm0, %v1030_v27, %v981_v7  ;;  %v1041_v36 = vperm.slane %v1033_v31, %v2568_v25  ;;  %v1021_v37 = vsel %vm445_vm0, %v989_v26, %v1020_v24 }
 0x177   : > { %v1037_v38 = vperm.slane %v1031_v35, %v2568_v25  ;;  %v1056_v39 = vrot.slane %v1017_v30, 4  ;;  %v997_v40 = vsel %vm445_vm0, %v965_v32, %v996_v33  ;;  %v1029_v41 = vperm.slane %v1021_v37, %v2568_v25 }
 0x178   : > { %v1054_v42 = vrot.slane %v1041_v36, 4  ;;  %v994_v43 = vrot.slane %v965_v32, 4  ;;  %v1013_v44 = vperm.slane %v1007_v34, %v2568_v25  ;;  %v1018_v46 = vrot.slane %v989_v26, 4 }
 0x179   : > { %v1050_v45 = vrot.slane %v1037_v38, 4  ;;  %v1005_v49 = vperm.slane %v997_v40, %v2568_v25  ;;  %v1046_v51 = vrot.slane %v1029_v41, 4  ;;  %v1057_v54 = vsel %vm445_vm0, %v1041_v36, %v1056_v39 }
 0x17a   : > { %v995_v52 = vsel %vm445_vm0, %v994_v43, %v953_v13  ;;  %v1019_v56 = vsel %vm445_vm0, %v1018_v46, %v977_v6  ;;  %v1055_v59 = vsel %vm445_vm0, %v1054_v42, %v1017_v30  ;;  %v1052_v0 = vrot.slane %v1013_v44, 4 }
 0x17b   : > { %v1051_v53 = vsel %vm445_vm0, %v1050_v45, %v1013_v44  ;;  %v1001_v55 = vperm.slane %v995_v52, %v2568_v25  ;;  %v1047_v58 = vsel %vm445_vm0, %v1046_v51, %v1005_v49  ;;  %v1025_v60 = vperm.slane %v1019_v56, %v2568_v25 }
 0x17c   : > { %v2153_v57 = vpack.i.bf16 %v1057_v54, %v1051_v53  ;;  %v2139_v61 = vpack.i.bf16 %v1047_v58, %v1055_v59  ;;  %v1048_v2 = vrot.slane %v1005_v49, 4  ;;  %v1053_v5 = vsel %vm445_vm0, %v1037_v38, %v1052_v0 }
 0x17d   : > { %v1044_v62 = vrot.slane %v1001_v55, 4  ;;  %v1042_v63 = vrot.slane %v1025_v60, 4  ;;  %v444_v10 = vrot.slane %v2582_v47, 4  ;;  %v457_v13 = vrot.slane %v2584_v48, 4 }
 0x17e   : > { %2154 = vxpose.xlu0.b32.start.end [1/1] (short) (narrow) %v2153_v57, 8  ;;  %2140 = vxpose.xlu2.b32.start.end [1/1] (short) (narrow) %v2139_v61, 8  ;;  %v1049_v7 = vsel %vm445_vm0, %v1029_v41, %v1048_v2  ;;  %v456_v17 = vperm.slane %v448_v14, %v2558_v8  ;;  %v460_v19 = vsel %vm445_vm0, %v2584_v48, %v459_v15 }
 0x17f   : > { %v1045_v3 = vsel %vm445_vm0, %v1025_v60, %v1044_v62  ;;  %v1043_v4 = vsel %vm445_vm0, %v1042_v63, %v1001_v55  ;;  %v446_v12 = vsel %vm445_vm0, %v444_v10, %v2549_v1  ;;  %v458_v18 = vsel %vm445_vm0, %v457_v13, %v2586_v50 }
 0x180   : > { %v2160_v6 = vpack.i.bf16 %v1045_v3, %v1053_v5  ;;  %v2146_v9 = vpack.i.bf16 %v1049_v7, %v1043_v4  ;;  %v452_v16 = vperm.slane %v446_v12, %v2558_v8  ;;  %v464_v1 = vperm.slane %v458_v18, %v2558_v8 }
 0x181   : > { %v483_v21 = vrot.slane %v456_v17, 4  ;;  %v468_v22 = vperm.slane %v460_v19, %v2558_v8 }
 0x182   : > { %v471_v20 = vrot.slane %v452_v16, 4  ;;  %v469_v23 = vrot.slane %v464_v1, 4 }
 0x183   : > { %v481_v24 = vrot.slane %v468_v22, 4  ;;  %v484_v26 = vsel %vm445_vm0, %v468_v22, %v483_v21 }
 0x184   : > { %v472_v47 = vsel %vm445_vm0, %v464_v1, %v471_v20  ;;  %v470_v28 = vsel %vm445_vm0, %v469_v23, %v452_v16  ;;  %v492_v50 = vperm.slane %v484_v26, %v2568_v25 }
 0x185   : > { %v480_v27 = vperm.slane %v472_v47, %v2568_v25  ;;  %v482_v48 = vsel %vm445_vm0, %v481_v24, %v456_v17  ;;  %v476_v29 = vperm.slane %v470_v28, %v2568_v25 }
 0x186   : > { %2161 = vxpose.xlu0.b32.start.end [1/1] (short) (narrow) %v2160_v6, 8  ;;  %2147 = vxpose.xlu2.b32.start.end [1/1] (short) (narrow) %v2146_v9, 8  ;;  %v488_v31 = vperm.slane %v482_v48, %v2568_v25  ;;  %v499_v32 = vrot.slane %v492_v50, 4 }
 0x187   : > { %v495_v30 = vrot.slane %v480_v27, 4  ;;  %v493_v34 = vrot.slane %v476_v29, 4 }
 0x188   : > { %v497_v36 = vrot.slane %v488_v31, 4  ;;  %v500_v37 = vsel %vm445_vm0, 0.0, %v499_v32  ;;  %v647_v45 = vsel %vm445_vm0, %v499_v32, %v488_v31 }
 0x189   : > { %v496_v35 = vsel %vm445_vm0, 0.0, %v495_v30  ;;  %v494_v39 = vsel %vm445_vm0, 0.0, %v493_v34  ;;  %v652_v40 = vrot.slane %v500_v37, 4  ;;  %v636_v41 = vsel %vm445_vm0, %v495_v30, %v476_v29 }
 0x18a   : > { %v641_v38 = vrot.slane %v496_v35, 4  ;;  %v498_v44 = vsel %vm445_vm0, 0.0, %v497_v36  ;;  %v640_v51 = vperm.slane %v636_v41, %v2558_v8  ;;  %v651_v56 = vperm.slane %v647_v45, %v2558_v8 }
 0x18b   : > { %v653_v52 = vsel %vm445_vm0, %v652_v40, %v498_v44 }
 0x18c   : > { %v642_v49 = vsel %vm445_vm0, %v641_v38, %v494_v39  ;;  %v657_v60 = vperm.slane %v653_v52, %v2558_v8  ;;  %v660_v62 = vrot.slane %v640_v51, 4  ;;  %v672_v0 = vrot.slane %v651_v56, 4 }
 0x18d   : > { %v646_v59 = vperm.slane %v642_v49, %v2558_v8 }
 0x18e   : > { %v670_v5 = vrot.slane %v657_v60, 4  ;;  %v673_v13 = vsel %vm445_vm0, %v657_v60, %v672_v0 }
 0x18f   : > { %v658_v4 = vrot.slane %v646_v59, 4  ;;  %v661_v7 = vsel %vm445_vm0, %v646_v59, %v660_v62  ;;  %v681_v1 = vperm.slane %v673_v13, %v2568_v25 }
 0x190   : > { %v671_v17 = vsel %vm445_vm0, %v670_v5, %v651_v56  ;;  %v669_v20 = vperm.slane %v661_v7, %v2568_v25 }
 0x191   : > { %v659_v16 = vsel %vm445_vm0, %v658_v4, %v640_v51  ;;  %v677_v26 = vperm.slane %v671_v17, %v2568_v25  ;;  %v686_v31 = vrot.slane %v681_v1, 4  ;;  %v568_v4 = vld [vmem:[%s432_s13] sm:$0xff] }
 0x192   : > { %v665_v24 = vperm.slane %v659_v16, %v2568_v25  ;;  %v688_v32 = vrot.slane %v669_v20, 4 }
 0x193   : > { %v682_v39 = vrot.slane %v677_v26, 4  ;;  %v687_v45 = vsel %vm445_vm0, %v686_v31, %v669_v20 }
 0x194   : > { %v684_v40 = vrot.slane %v665_v24, 4 }
 0x195   : > { %v683_v52 = vsel %vm445_vm0, %v682_v39, %v665_v24  ;;  %v581_v24 = vrot.slane %v568_v4, 4 }
 0x217   : > { %v2141_v33 = vpop.trf.xlu2 }
 0x218   : > { %v2145_v42 = vunpack.i.h.bf16 %v2141_v33  ;;  %v2142_v43 = vunpack.i.l.bf16 %v2141_v33 }
 0x21a   : > { %v1314_v53 = vrot.slane %v2145_v42, 4  ;;  %v1326_v54 = vrot.slane %v2142_v43, 4 }
 0x21f   : > { %v2148_v46 = vpop.trf.xlu2 }
 0x220   : > { %v2149_v58 = vunpack.i.l.bf16 %v2148_v46  ;;  %v2152_v61 = vunpack.i.h.bf16 %v2148_v46  ;;  %v689_v46 = vsel %vm445_vm0, %v681_v1, %v688_v32 }
 0x222   : > { %v2155_v55 = vpop.trf.xlu0  ;;  %v1315_v3 = vsel %vm445_vm0, %v1314_v53, %v2149_v58  ;;  %v1320_v6 = vrot.slane %v2152_v61, 4  ;;  %v685_v53 = vsel %vm445_vm0, %v677_v26, %v684_v40 }
 0x223   : > { %v2156_v57 = vunpack.i.l.bf16 %v2155_v55  ;;  %v2159_v63 = vunpack.i.h.bf16 %v2155_v55  ;;  %v1319_v11 = vperm.slane %v1315_v3, %v2558_v8 }
 0x225   : > { %v1327_v2 = vsel %vm445_vm0, %v1326_v54, %v2156_v57  ;;  %v1332_v9 = vrot.slane %v2159_v63, 4  ;;  %v1340_v23 = vrot.slane %v1319_v11, 4  ;;  %v635_v54 = vld [vmem:[%s351_s23] sm:$0xff]  ;;  %s2375_s23 = smov 16  }
 0x226   : > { %v1331_v10 = vperm.slane %v1327_v2, %v2558_v8 }
 0x228   : > { %v1352_v47 = vrot.slane %v1331_v10, 4 }
 0x22a   : > { %v2162_v12 = vpop.trf.xlu0 }
 0x22b   : > { %v2166_v14 = vunpack.i.h.bf16 %v2162_v12  ;;  %v2163_v15 = vunpack.i.l.bf16 %v2162_v12 }
 0x22d   : > { %v1321_v18 = vsel %vm445_vm0, %v1320_v6, %v2166_v14  ;;  %v1333_v19 = vsel %vm445_vm0, %v1332_v9, %v2163_v15 }
 0x22e   : > { %v1337_v21 = vperm.slane %v1333_v19, %v2558_v8  ;;  %v1325_v22 = vperm.slane %v1321_v18, %v2558_v8 }
 0x230   : > { %v1341_v27 = vsel %vm445_vm0, %v1325_v22, %v1340_v23  ;;  %v1353_v28 = vsel %vm445_vm0, %v1337_v21, %v1352_v47  ;;  %v1338_v50 = vrot.slane %v1325_v22, 4  ;;  %v1350_v48 = vrot.slane %v1337_v21, 4 }
 0x231   : > { %v1349_v29 = vperm.slane %v1341_v27, %v2568_v25  ;;  %v1361_v30 = vperm.slane %v1353_v28, %v2568_v25 }
 0x232   : > { %v1339_v33 = vsel %vm445_vm0, %v1338_v50, %v1319_v11  ;;  %v1351_v34 = vsel %vm445_vm0, %v1350_v48, %v1331_v10 }
 0x233   : > { %v1366_v35 = vrot.slane %v1361_v30, 4  ;;  %v1368_v36 = vrot.slane %v1349_v29, 4  ;;  %v1345_v37 = vperm.slane %v1339_v33, %v2568_v25  ;;  %v1357_v38 = vperm.slane %v1351_v34, %v2568_v25 }
 0x235   : > { %v1367_v41 = vsel %vm445_vm0, %v1366_v35, %v1349_v29  ;;  %v1369_v42 = vsel %vm445_vm0, %v1361_v30, %v1368_v36  ;;  %v1362_v43 = vrot.slane %v1357_v38, 4  ;;  %v1364_v44 = vrot.slane %v1345_v37, 4 }
 0x236   : > { %1435 = vmatpush.msra.mxu2 %v1367_v41  ;;  %1458 = vmatpush.msra.mxu3 %v1369_v42 }
 0x237   : > { %2011 = vmatmul.msk.f32.vlgmr.msra.gmra.mxu2 %vm1370_vm1, %v687_v45  ;;  %2012 = vmatmul.msk.f32.vlgmr.msra.gmra.mxu3 %vm1370_vm1, %v689_v46  ;;  %v1363_v49 = vsel %vm445_vm0, %v1362_v43, %v1345_v37  ;;  %v1365_v51 = vsel %vm445_vm0, %v1357_v38, %v1364_v44 }
 0x238   : > { %1389 = vmatpush.msra.mxu0 %v1363_v49  ;;  %1412 = vmatpush.msra.mxu1 %v1365_v51 }
 0x239   : > { %2009 = vmatmul.msk.f32.vlgmr.msra.gmra.mxu0 %vm1370_vm1, %v683_v52  ;;  %2010 = vmatmul.msk.f32.vlgmr.msra.gmra.mxu1 %vm1370_vm1, %v685_v53 }
 0x2b6   : > { %v1391_v55 = vpop.f32.mrf.mxu0  ;;  %v1414_v56 = vpop.f32.mrf.mxu1 }
 0x2b7   : > { %v1392_v57 = vadd.f32 %v1391_v55, %v635_v54  ;;  %v1415_v58 = vadd.f32 %v1414_v56, %v635_v54 }
 0x2b9   : > { %v1466_v59 = vsel %vm1370_vm1, %v1415_v58, -inf  ;;  %v1463_v60 = vsel %vm1370_vm1, %v1392_v57, -inf }
 0x2ba   : > { %v1437_v61 = vpop.f32.mrf.mxu2  ;;  %v1460_v62 = vpop.f32.mrf.mxu3  ;;  %1467 = vmax.xlane.f32.xlu1 %v1466_v59  ;;  %1464 = vmax.xlane.f32.xlu0 %v1463_v60 }
 0x2bb   : > { %v1461_v63 = vadd.f32 %v1460_v62, %v635_v54  ;;  %v1438_v0 = vadd.f32 %v1437_v61, %v635_v54 }
 0x2bd   : > { %v1472_v2 = vsel %vm1370_vm1, %v1461_v63, -inf  ;;  %v1469_v3 = vsel %vm1370_vm1, %v1438_v0, -inf }
 0x2be   : > { %1473 = vmax.xlane.f32.xlu2 %v1472_v2 }
 0x2c2   : > { %1470 = vmax.xlane.f32.xlu1 %v1469_v3 }
 0x2ce   : > { %576 = vrot.lane.b32.xlu0 %v568_v4, %s2371_s16 }
 0x2d6   : > { %573 = vrot.lane.b32.xlu2 %v568_v4, %s2370_s30 }
 0x2db   : > { %570 = vrot.lane.b32.xlu1 %v568_v4, %s2369_s15  ;;  %s2288_s15 = sshra.s32 %s1840_s14, 4  ;;  %s2289_s15 = int_to_ptr.hbm [resolvable:$true] %s2288_s15 }
 0x2dc   : > { %s2290_s30 = scalar_lea.hbm %s2289_s15, 8  ;;  %p2295_p11 = scmp.lt.s32.totalorder %s2289_s15, %s2871_s7 }
 0x2dd   : > { %p2291_p1 = scmp.ne.s32.totalorder %s2289_s15, %s2290_s30  ;;  %p2296_p12 = scmp.lt.s32.totalorder %s2294_s17, %s2290_s30 }
 0x2df   : > { %p2292_p9 = pnand %p2291_p1, %p2488_p4  ;;  %p2297_p13 = por %p2296_p12, %p2295_p11 }
 0x2e1   : > { %p2293_p10 = pneg %p2292_p9 }
 0x2e3   : > { %p2298_p0 = pnand %p2297_p13, %p2293_p10 }
 0x32d   : > { %v1468_v5 = vpop.xlane.xlu1 %1467  ;;  %v1465_v6 = vpop.xlane.xlu0 %1464 }
 0x32e   : > { %v1475_v7 = vsub.f32 %v1392_v57, %v1465_v6  ;;  %v1476_v15 = vsub.f32 %v1415_v58, %v1468_v5 }
 0x330   : > { %v1479_v9 = vmul.f32 1.442695, %v1475_v7  ;;  %v1481_v20 = vmul.f32 1.442695, %v1476_v15 }
 0x331   : > { %v1474_v10 = vpop.xlane.xlu2 %1473 }
 0x332   : > { %v1478_v11 = vsub.f32 %v1461_v63, %v1474_v10  ;;  %2168 = vpow2.f32 %v1479_v9 }
 0x334   : > { %v1485_v12 = vmul.f32 1.442695, %v1478_v11 }
 0x335   : > { %v1471_v13 = vpop.xlane.xlu1 %1470 }
 0x336   : > { %2170 = vpow2.f32 %v1485_v12  ;;  %v1477_v14 = vsub.f32 %v1438_v0, %v1471_v13 }
 0x338   : > { %v1483_v16 = vmul.f32 1.442695, %v1477_v14  ;;  %v2713_v17 = vpop.eup %2168 }
 0x339   : > { %v1487_v18 = vsel %vm1370_vm1, %v2713_v17, 0.0  ;;  %v574_v21 = vpop.permute.xlu2 %573 }
 0x33a   : > { %2172 = vpow2.f32 %v1483_v16  ;;  %1488 = vadd.xlane.f32.xlu2 %v1487_v18  ;;  %v579_v47 = vrot.slane %v574_v21, 4  ;;  %v582_v50 = vsel %vm445_vm0, %v574_v21, %v581_v24 }
 0x33b   : > { %2174 = vpow2.f32 %v1481_v20  ;;  %v590_v31 = vperm.slane %v582_v50, %v2558_v8 }
 0x33c   : > { %v2717_v19 = vpop.eup %2170  ;;  %v580_v27 = vsel %vm445_vm0, %v579_v47, %v568_v4 }
 0x33d   : > { %v1496_v1 = vsel %vm1370_vm1, %v2717_v19, 0.0  ;;  %v586_v29 = vperm.slane %v580_v27, %v2558_v8  ;;  %v617_v36 = vrot.slane %v590_v31, 4 }
 0x33e   : > { %1497 = vadd.xlane.f32.xlu0 %v1496_v1 }
 0x33f   : > { %v605_v32 = vrot.slane %v586_v29, 4 }
 0x340   : > { %v2721_v22 = vpop.eup %2172  ;;  %v577_v28 = vpop.permute.xlu0 %576 }
 0x341   : > { %v1493_v23 = vsel %vm1370_vm1, %v2721_v22, 0.0  ;;  %v2725_v26 = vpop.eup %2174  ;;  %v591_v30 = vrot.slane %v577_v28, 4 }
 0x342   : > { %1494 = vadd.xlane.f32.xlu1 %v1493_v23  ;;  %v1490_v48 = vsel %vm1370_vm1, %v2725_v26, 0.0 }
 0x34a   : > { %1491 = vadd.xlane.f32.xlu1 %v1490_v48 }
 0x34d   : > { %v571_v33 = vpop.permute.xlu1 %570 }
 0x34e   : > { %v592_v34 = vsel %vm445_vm0, %v591_v30, %v571_v33  ;;  %v593_v35 = vrot.slane %v571_v33, 4 }
 0x34f   : > { %v598_v37 = vperm.slane %v592_v34, %v2558_v8  ;;  %v1507_v34 = vld [vmem:[%s361_s28] sm:$0xff] }
 0x350   : > { %v594_v38 = vsel %vm445_vm0, %v577_v28, %v593_v35 }
 0x351   : > { %v602_v39 = vperm.slane %v594_v38, %v2558_v8  ;;  %v603_v40 = vrot.slane %v598_v37, 4  ;;  %v606_v41 = vsel %vm445_vm0, %v598_v37, %v605_v32 }
 0x352   : > { %v614_v42 = vperm.slane %v606_v41, %v2568_v25 }
 0x353   : > { %v604_v43 = vsel %vm445_vm0, %v603_v40, %v586_v29  ;;  %v615_v44 = vrot.slane %v602_v39, 4  ;;  %v618_v45 = vsel %vm445_vm0, %v602_v39, %v617_v36 }
 0x354   : > { %v610_v46 = vperm.slane %v604_v43, %v2568_v25  ;;  %v626_v49 = vperm.slane %v618_v45, %v2568_v25  ;;  %v629_v51 = vrot.slane %v614_v42, 4 }
 0x355   : > { %v616_v52 = vsel %vm445_vm0, %v615_v44, %v590_v31 }
 0x356   : > { %v622_v53 = vperm.slane %v616_v52, %v2568_v25  ;;  %v627_v54 = vrot.slane %v610_v46, 4  ;;  %v630_v55 = vsel %vm445_vm0, 0.0, %v629_v51  ;;  %v633_v56 = vrot.slane %v626_v49, 4 }
 0x357   : > { %v1516_v57 = vsel %vm445_vm0, %v629_v51, %v610_v46  ;;  %v1521_v58 = vrot.slane %v630_v55, 4 }
 0x358   : > { %v628_v59 = vsel %vm445_vm0, 0.0, %v627_v54  ;;  %v631_v60 = vrot.slane %v622_v53, 4  ;;  %v634_v61 = vsel %vm445_vm0, 0.0, %v633_v56  ;;  %v1520_v62 = vperm.slane %v1516_v57, %v2558_v8 }
 0x359   : > { %v1532_v63 = vrot.slane %v634_v61, 4  ;;  %v1522_v0 = vsel %vm445_vm0, %v1521_v58, %v628_v59  ;;  %v1527_v2 = vsel %vm445_vm0, %v633_v56, %v622_v53 }
 0x35a   : > { %v632_v3 = vsel %vm445_vm0, 0.0, %v631_v60  ;;  %v1526_v4 = vperm.slane %v1522_v0, %v2558_v8  ;;  %v1531_v5 = vperm.slane %v1527_v2, %v2558_v8  ;;  %v1540_v6 = vrot.slane %v1520_v62, 4 }
 0x35b   : > { %v1533_v7 = vsel %vm445_vm0, %v1532_v63, %v632_v3 }
 0x35c   : > { %v1537_v9 = vperm.slane %v1533_v7, %v2558_v8  ;;  %v1538_v10 = vrot.slane %v1526_v4, 4  ;;  %v1541_v11 = vsel %vm445_vm0, %v1526_v4, %v1540_v6  ;;  %v1552_v12 = vrot.slane %v1531_v5, 4 }
 0x35d   : > { %v1549_v13 = vperm.slane %v1541_v11, %v2568_v25 }
 0x35e   : > { %v1539_v14 = vsel %vm445_vm0, %v1538_v10, %v1520_v62  ;;  %v1550_v15 = vrot.slane %v1537_v9, 4  ;;  %v1553_v16 = vsel %vm445_vm0, %v1537_v9, %v1552_v12 }
 0x35f   : > { %v1545_v18 = vperm.slane %v1539_v14, %v2568_v25  ;;  %v1561_v20 = vperm.slane %v1553_v16, %v2568_v25  ;;  %v1568_v1 = vrot.slane %v1549_v13, 4 }
 0x360   : > { %v1551_v21 = vsel %vm445_vm0, %v1550_v15, %v1531_v5 }
 0x361   : > { %v1557_v23 = vperm.slane %v1551_v21, %v2568_v25  ;;  %v1564_v47 = vrot.slane %v1545_v18, 4  ;;  %v1569_v24 = vsel %vm445_vm0, %v1561_v20, %v1568_v1  ;;  %v1566_v27 = vrot.slane %v1561_v20, 4 }
 0x362   : > { %1657 = vmatpush.msrb.mxu3 %v1569_v24 }
 0x363   : > { %v1565_v28 = vsel %vm445_vm0, %v1557_v23, %v1564_v47  ;;  %v1562_v50 = vrot.slane %v1557_v23, 4  ;;  %v1567_v48 = vsel %vm445_vm0, %v1566_v27, %v1549_v13 }
 0x364   : > { %1611 = vmatpush.msrb.mxu1 %v1565_v28  ;;  %1634 = vmatpush.msrb.mxu2 %v1567_v48 }
 0x365   : > { %v1563_v29 = vsel %vm445_vm0, %v1562_v50, %v1545_v18 }
 0x366   : > { %1588 = vmatpush.msrb.mxu0 %v1563_v29 }
 0x3ad   : > { %v1489_v30 = vpop.xlane.xlu2 %1488 }
 0x3ae   : > { %2176 = vrcp.f32 %v1489_v30 }
 0x3b1   : > { %v1498_v31 = vpop.xlane.xlu0 %1497 }
 0x3b2   : > { %2178 = vrcp.f32 %v1498_v31 }
 0x3b4   : > { %v2177_v32 = vpop.eup %2176 }
 0x3b5   : > { %v1495_v33 = vpop.xlane.xlu1 %1494  ;;  %v1503_v35 = vmul.f32 %v2177_v32, %v2713_v17 }
 0x3b6   : > { %2180 = vrcp.f32 %v1495_v33 }
 0x3b7   : > { %v1508_v37 = vadd.f32 %v1507_v34, %v1503_v35 }
 0x3b8   : > { %v2179_v36 = vpop.eup %2178 }
 0x3b9   : > { %v1506_v38 = vmul.f32 %v2179_v36, %v2717_v19  ;;  %v1512_v39 = vmax.f32 %v1508_v37, 0.0 }
 0x3bb   : > { %v1511_v40 = vadd.f32 %v1507_v34, %v1506_v38  ;;  %2013 = vmatmul.msk.f32.vlgmr.msrb.gmra.mxu0 %vm1370_vm1, %v1512_v39 }
 0x3bc   : > { %v2181_v41 = vpop.eup %2180 }
 0x3bd   : > { %v1505_v42 = vmul.f32 %v2181_v41, %v2721_v22  ;;  %v1492_v43 = vpop.xlane.xlu1 %1491  ;;  %v1515_v44 = vmax.f32 %v1511_v40, 0.0 }
 0x3be   : > { %2182 = vrcp.f32 %v1492_v43 }
 0x3bf   : > { %2016 = vmatmul.msk.f32.vlgmr.msrb.gmra.mxu3 %vm1370_vm1, %v1515_v44  ;;  %v1510_v45 = vadd.f32 %v1507_v34, %v1505_v42 }
 0x3c1   : > { %v1514_v46 = vmax.f32 %v1510_v45, 0.0 }
 0x3c3   : > { %2015 = vmatmul.msk.f32.vlgmr.msrb.gmra.mxu2 %vm1370_vm1, %v1514_v46 }
 0x3c4   : > { %v2183_v17 = vpop.eup %2182 }
 0x3c5   : > { %v1504_v49 = vmul.f32 %v2183_v17, %v2725_v26 }
 0x3c7   : > { %v1509_v19 = vadd.f32 %v1507_v34, %v1504_v49 }
 0x3c9   : > { %v1513_v51 = vmax.f32 %v1509_v19, 0.0 }
 0x3cb   : > { %2014 = vmatmul.msk.f32.vlgmr.msrb.gmra.mxu1 %vm1370_vm1, %v1513_v51 }
 0x438   : > { %v1590_v52 = vpop.f32.mrf.mxu0 }
 0x439   : > { %v1664_v54 = vrot.slane %v1590_v52, 4 }
 0x442   : > { %v1659_v53 = vpop.f32.mrf.mxu3 }
 0x443   : > { %v1674_v55 = vrot.slane %v1659_v53, 4 }
 0x446   : > { %v1636_v22 = vpop.f32.mrf.mxu2 }
 0x447   : > { %v1662_v56 = vrot.slane %v1636_v22, 4  ;;  %v1665_v57 = vsel %vm445_vm0, %v1636_v22, %v1664_v54  ;;  %v1792_v22 = vld [vmem:[#allocation7 + $0x18] sm:$0xff] }
 0x448   : > { %v1673_v58 = vperm.slane %v1665_v57, %v2558_v8  ;;  %v1613_v59 = vpop.f32.mrf.mxu1  ;;  %1813 = vmatpush.msra.mxu0 %v1792_v22 }
 0x449   : > { %v1663_v60 = vsel %vm445_vm0, %v1662_v56, %v1590_v52  ;;  %v1675_v61 = vsel %vm445_vm0, %v1674_v55, %v1613_v59  ;;  %v1676_v26 = vrot.slane %v1613_v59, 4  ;;  %v1791_v55 = vld [vmem:[#allocation7 + $0x10] sm:$0xff]  ;;  %v1789_v56 = vld [vmem:[#allocation7] sm:$0xff] }
 0x44a   : > { %v1669_v62 = vperm.slane %v1663_v60, %v2558_v8  ;;  %v1681_v63 = vperm.slane %v1675_v61, %v2558_v8  ;;  %v1700_v3 = vrot.slane %v1673_v58, 4  ;;  %1814 = vmatpush.msra.mxu0 %v1791_v55 }
 0x44b   : > { %v1677_v0 = vsel %vm445_vm0, %v1659_v53, %v1676_v26 }
 0x44c   : > { %v1688_v2 = vrot.slane %v1669_v62, 4  ;;  %v1685_v4 = vperm.slane %v1677_v0, %v2558_v8  ;;  %v1686_v5 = vrot.slane %v1681_v63, 4 }
 0x44e   : > { %v1687_v6 = vsel %vm445_vm0, %v1686_v5, %v1669_v62  ;;  %v1689_v7 = vsel %vm445_vm0, %v1681_v63, %v1688_v2  ;;  %v1698_v9 = vrot.slane %v1685_v4, 4  ;;  %v1701_v10 = vsel %vm445_vm0, %v1685_v4, %v1700_v3  ;;  %v2167_v62 = vld [vmem:[%s2870_s6] ss:$0 sm:$0xff] }
 0x44f   : > { %v1693_v11 = vperm.slane %v1687_v6, %v2568_v25  ;;  %v1697_v12 = vperm.slane %v1689_v7, %v2568_v25  ;;  %v1709_v13 = vperm.slane %v1701_v10, %v2568_v25 }
 0x450   : > { %v1699_v14 = vsel %vm445_vm0, %v1698_v9, %v1673_v58 }
 0x451   : > { %v1705_v15 = vperm.slane %v1699_v14, %v2568_v25  ;;  %v1710_v16 = vrot.slane %v1693_v11, 4  ;;  %v1712_v18 = vrot.slane %v1697_v12, 4  ;;  %v1716_v20 = vrot.slane %v1709_v13, 4 }
 0x453   : > { %v1713_v1 = vsel %vm445_vm0, 0.0, %v1712_v18  ;;  %v1714_v21 = vrot.slane %v1705_v15, 4  ;;  %v1717_v23 = vsel %vm445_vm0, 0.0, %v1716_v20  ;;  %v1718_v47 = vsel %vm445_vm0, %v1712_v18, %v1693_v11 }
 0x454   : > { %v1723_v24 = vrot.slane %v1713_v1, 4  ;;  %v1734_v27 = vrot.slane %v1717_v23, 4  ;;  %v1729_v28 = vsel %vm445_vm0, %v1716_v20, %v1705_v15  ;;  %v1711_v50 = vsel %vm445_vm0, 0.0, %v1710_v16 }
 0x455   : > { %v1722_v48 = vperm.slane %v1718_v47, %v2558_v8  ;;  %v1715_v29 = vsel %vm445_vm0, 0.0, %v1714_v21  ;;  %v1733_v30 = vperm.slane %v1729_v28, %v2558_v8 }
 0x456   : > { %v1724_v31 = vsel %vm445_vm0, %v1723_v24, %v1711_v50  ;;  %v1735_v32 = vsel %vm445_vm0, %v1734_v27, %v1715_v29 }
 0x457   : > { %v1728_v33 = vperm.slane %v1724_v31, %v2558_v8  ;;  %v1739_v34 = vperm.slane %v1735_v32, %v2558_v8  ;;  %v1742_v35 = vrot.slane %v1722_v48, 4  ;;  %v1754_v36 = vrot.slane %v1733_v30, 4 }
 0x459   : > { %v1743_v37 = vsel %vm445_vm0, %v1728_v33, %v1742_v35  ;;  %v1755_v38 = vsel %vm445_vm0, %v1739_v34, %v1754_v36  ;;  %v1740_v39 = vrot.slane %v1728_v33, 4  ;;  %v1752_v40 = vrot.slane %v1739_v34, 4 }
 0x45a   : > { %v1751_v41 = vperm.slane %v1743_v37, %v2568_v25  ;;  %v1763_v42 = vperm.slane %v1755_v38, %v2568_v25 }
 0x45b   : > { %v1741_v43 = vsel %vm445_vm0, %v1740_v39, %v1722_v48  ;;  %v1753_v44 = vsel %vm445_vm0, %v1752_v40, %v1733_v30 }
 0x45c   : > { %v1770_v45 = vrot.slane %v1751_v41, 4  ;;  %v1768_v46 = vrot.slane %v1763_v42, 4  ;;  %v1747_v8 = vperm.slane %v1741_v43, %v2568_v25  ;;  %v1759_v17 = vperm.slane %v1753_v44, %v2568_v25  ;;  %v1790_v25 = vld [vmem:[#allocation7 + $0x8] sm:$0xff] }
 0x45d   : > { %1815 = vmatpush.msra.mxu0 %v1790_v25 }
 0x45e   : > { %v1771_v49 = vsel %vm445_vm0, %v1763_v42, %v1770_v45  ;;  %v1769_v19 = vsel %vm445_vm0, %v1768_v46, %v1751_v41  ;;  %v1764_v51 = vrot.slane %v1759_v17, 4  ;;  %v1766_v52 = vrot.slane %v1747_v8, 4 }
 0x45f   : > { %1781 = vrot.lane.b32.xlu0 %v1771_v49, %s2374_s5  ;;  %1777 = vrot.lane.b32.xlu2 %v1769_v19, %s2375_s23 }
 0x460   : > { %v1767_v53 = vsel %vm445_vm0, %v1759_v17, %v1766_v52  ;;  %v1765_v54 = vsel %vm445_vm0, %v1764_v51, %v1747_v8  ;;  %1816 = vmatpush.msra.mxu0 %v1789_v56 }
 0x461   : > { %1773 = vrot.lane.b32.xlu1 %v1767_v53, %s2376_s24 }
 0x4b9   : > { %v1778_v58 = vpop.permute.xlu2 %1777 }
 0x4d1   : > { %v1782_v60 = vpop.permute.xlu0 %1781 }
 0x4d3   : > { %v1774_v57 = vpop.permute.xlu1 %1773 }
 0x4d4   : > { %v1784_v59 = vsel %vm1370_vm1, %v1765_v54, %v1774_v57 }
 0x4d5   : > { %v1786_v61 = vsel %vm1785_vm2, %v1784_v59, %v1778_v58 }
 0x4d6   : > { %v1788_v26 = vsel %vm1787_vm3, %v1786_v61, %v1782_v60 }
 0x4d7   : > { %2017 = vmatmul.msk.f32.vlgmr.msra.gmra.mxu0 %vm1797_vm4, %v1788_v26 }
 0x554   : > { %v1818_v63 = vpop.f32.mrf.mxu0 }
 0x555   : > { %v1819_v0 = vadd.f32 %v2167_v62, %v1818_v63 }
 0x557   : > { %v1821_v2 = vmax.f32 %v1819_v0, 0.0 }
 0x559   : > { %1822 = vst.msk [vmem:[%s417_s20] sm:$0xff] %vm1797_vm4, %v1821_v2 }
 0x55a   : > { %2301 = shalt.err (!%p2298_p0)
}
 0x55b   : > { %2030 = dma.vmem_to_hbm [thread:$0]  (%p2488_p4), %s1838_s12, 128, %s1840_s14, %s1824_s27  }
 0x55c PF: > { %s2894_s19 = sld [smem:[#allocation13_spill]]  ;;  %p2044_p2 = pnand %p1996_p6, %p2496_p7 }
 0x55e   : > { %p2045_p5 = pneg %p2044_p2 }
 0x562   : > { %s1851_s23 = sand.u32 1, %s2894_s19  }
 0x563   : > { %s1852_s24 = scalar_lea.sflag [#allocation4], %s1851_s23 }
 0x564   : > { %2339 = dma.done.wait (%p2045_p5), %s1852_s24, 128  }
 0x565   : > { %2341 = vsyncadd (%p2045_p5), %s1852_s24, 4294967168  ;;  %s26_s29 = sadd.s32 1, %s2364_s29   ;;  %s2896_s26 = sld [smem:[#allocation14_spill]] }
 0x566   : > { %p23_p8 = scmp.ge.s32.totalorder %s26_s29, 4   ;;  %s2897_s28 = sld [smem:[#allocation18_spill]] }
 0x567   : > { %s2898_s27 = sld [smem:[#allocation15_spill]]  ;;  %s2900_s24 = smov %s2348_s25 }
 0x568   : > { %s2899_s11 = sld [smem:[#allocation16_spill]] }
 0x56a   :  { %25 = sbr.rel (!%p23_p8) target bundleno = 10 (0xa), region = 119 }
 0x56b   : > { %s2901_s25 = smov %s2896_s26 }
 0x56c   : > { %s2902_s26 = smov %s2897_s28 }
 0x56e   : > { %s2903_s28 = smov %s2899_s11 }
 0x56f   :  { %1858 = vsyncpa [#allocation3], 1 }
 0x570   :  { %1860 = vsyncpa [#allocation3 + $0x1], 1 }
 0x571   :  { %1861 = vsyncpa [#allocation6], 1 }
 0x572   :  { %1863 = vsyncpa [#allocation6 + $0x1], 1 }
 0x573   :  { %1864 = vsyncpa [#allocation4], 1 }
 0x574   :  { %1866 = vsyncpa [#allocation4 + $0x1], 1 }

</bundles_post_ra>
